<compile_context>
chip_gen: v7x
topology: tpu7x:2x2x1
jax: 0.10.0
libtpu: 0.0.40
codegen_flags: <defaults>
</compile_context>

<pallas_src>
import functools

import jax
import jax.numpy as jnp
from jax import lax
from jax.experimental import pallas as pl
from jax.experimental.pallas import tpu as pltpu


# ---------------------------------------------------------------------------
# Kernel 1: per-pixel channel stats (first-max argmax label, max softmax prob)
# ---------------------------------------------------------------------------
def _stats_kernel(x_ref, mp_ref, lab_ref, *, num_classes):
    """x_ref: (C, T) f32 logits (classes on sublanes, pixels lane-dense).
    mp_ref: (1, T) f32 max softmax prob;  lab_ref: (1, T) i32 argmax label."""
    C = num_classes
    best = x_ref[0:1, :]
    lab = jnp.zeros_like(best, dtype=jnp.int32)
    for c in range(1, C):                      # first-max rule == jnp.argmax ties
        v = x_ref[c:c + 1, :]
        upd = v > best
        best = jnp.where(upd, v, best)
        lab = jnp.where(upd, jnp.int32(c), lab)
    denom = jnp.exp(x_ref[0:1, :] - best)
    for c in range(1, C):
        denom = denom + jnp.exp(x_ref[c:c + 1, :] - best)
    mp_ref[...] = 1.0 / denom                   # max softmax prob = 1 / sum exp
    lab_ref[...] = lab


def _compute_stats(x, *, tile):
    """x: (B, C, N) f32 -> (mp, lab) each (B, 1, N)."""
    B, C, N = x.shape
    return pl.pallas_call(
        functools.partial(_stats_kernel, num_classes=C),
        out_shape=(jax.ShapeDtypeStruct((B, 1, N), jnp.float32),
                   jax.ShapeDtypeStruct((B, 1, N), jnp.int32)),
        grid_spec=pltpu.PrefetchScalarGridSpec(
            num_scalar_prefetch=0,
            grid=(B, N // tile),
            in_specs=[pl.BlockSpec((None, C, tile), lambda b, i: (b, 0, i))],
            out_specs=(pl.BlockSpec((None, 1, tile), lambda b, i: (b, 0, i)),
                       pl.BlockSpec((None, 1, tile), lambda b, i: (b, 0, i)))),
        compiler_params=pltpu.CompilerParams(
            dimension_semantics=("parallel", "parallel")),
    )(x)


# ---------------------------------------------------------------------------
# Kernel 2: pairwise same-class rank (top-k) + confidence mask + pseudo labels
# ---------------------------------------------------------------------------
def _rank_mask_kernel(k_tab_ref,        # SMEM (B, C) i32 : scalar prefetch
                      mp_b_ref,         # VMEM (1, TILE_B) f32 : probs, b-strip
                      lab_b_ref,        # VMEM (1, TILE_B) i32 : labels, b-strip
                      mp_a_ref,         # VMEM (TILE_A, 1) f32 : probs, a-strip
                      lab_a_ref,        # VMEM (TILE_A, 1) i32 : labels, a-strip
                      out_ref,          # VMEM (1, TILE_B) i32
                      rank_ref,         # scratch (1, TILE_B) f32 : rank accum
                      *, num_classes, tile_a, tile_b,
                      conf_th, fraction, ignore_index):
    C = num_classes
    b_img = pl.program_id(0)
    b_tile = pl.program_id(1)
    a_step = pl.program_id(2)
    use_topk = 0.0 < fraction < 1.0

    if use_topk:
        @pl.when(a_step == 0)
        def _init():
            rank_ref[...] = jnp.zeros_like(rank_ref)

        # ---- every step: rank this a-strip against the whole b-strip --------
        mp_a = mp_a_ref[...]                                  # (TILE_A, 1)
        lab_a = lab_a_ref[...]
        mp_b = mp_b_ref[...]                                  # (1, TILE_B)
        lab_b = lab_b_ref[...]
        a_ids = (lax.broadcasted_iota(jnp.int32, (tile_a, 1), 0)
                 + a_step * tile_a)
        b_ids = (lax.broadcasted_iota(jnp.int32, (1, tile_b), 1)
                 + b_tile * tile_b)
        same = lab_a == lab_b                                 # (TILE_A, TILE_B)
        beats = same & ((mp_a > mp_b) |
                        ((mp_a == mp_b) & (a_ids < b_ids)))
        ones_row = jnp.ones((1, tile_a), jnp.bfloat16)        # 0/1 exact in bf16
        rank_ref[...] += jnp.dot(ones_row, beats.astype(jnp.bfloat16),
                                 preferred_element_type=jnp.float32)

    # ---- last a-step: combine masks and emit the pseudo labels --------------
    @pl.when(a_step == pl.num_programs(2) - 1)
    def _finalize():
        lab_b = lab_b_ref[...]
        if 0.0 < conf_th < 1.0:
            keep = mp_b_ref[...] > jnp.float32(conf_th)
        else:
            keep = jnp.zeros((1, tile_b), jnp.bool_)
        if use_topk:
            kv = jnp.zeros((1, tile_b), jnp.float32)
            for c in range(C):                                # label -> k[class]
                k_c = k_tab_ref[b_img, c].astype(jnp.float32)
                kv = jnp.where(lab_b == c, k_c, kv)
            keep = keep | (rank_ref[...] < kv)
        out_ref[...] = jnp.where(keep, lab_b, jnp.int32(ignore_index))


def _pick_tile(n, cap, aligns=(128, 8)):
    """Largest divisor of n that is <= cap and a multiple of one of `aligns`
    (in preference order); falls back to n (full extent, always legal)."""
    if n <= cap:
        return n
    for align in aligns:
        start = cap - cap % align
        for t in range(start, 0, -align):
            if n % t == 0:
                return t
    return n


def self_training_pseudo_label(pred, *, conf_th=0.9, fraction=0.66,
                               ignore_index=255, tile_a=256, tile_b=512,
                               stats_tile=4096):
    """pred: (B, C, H, W) float logits -> (B, H, W) int32 pseudo labels."""
    B, C, H, W = pred.shape
    N = H * W
    x = pred.reshape(B, C, N).astype(jnp.float32)             # (B, C, N)

    # ---- pass 1: per-pixel argmax label & max softmax prob (Pallas) ---------
    t_stat = _pick_tile(N, stats_tile, aligns=(128, 8))
    mp, lab = _compute_stats(x, tile=t_stat)                  # (B, 1, N) each

    # Per-image, per-class k = floor(count_c * fraction) from the SAME labels
    # the rank kernel will use -> exact agreement.  O(B*C*N) once, in XLA.
    lab_flat = lab[:, 0, :]                                    # (B, N)
    counts = jnp.sum(lab_flat[:, :, None] == jnp.arange(C)[None, None, :],
                     axis=1).astype(jnp.float32)               # (B, C)
    k_tab = jnp.floor(counts * jnp.float32(fraction)).astype(jnp.int32)

    # Column-form views of the SAME arrays for the a-side (layout plumbing,
    # bit-identical values).
    mp_col = mp.reshape(B, N, 1)
    lab_col = lab.reshape(B, N, 1)

    ta = _pick_tile(N, tile_a, aligns=(128, 8))                # a-strip (MXU K dim)
    tb = _pick_tile(N, tile_b, aligns=(128,))                  # b-strip (lane dim)
    use_topk = 0.0 < fraction < 1.0
    na = (N // ta) if use_topk else 1
    nb = N // tb
    grid = (B, nb, na)

    kernel = functools.partial(
        _rank_mask_kernel, num_classes=C, tile_a=ta, tile_b=tb,
        conf_th=conf_th, fraction=fraction, ignore_index=ignore_index)

    out = pl.pallas_call(
        kernel,
        out_shape=jax.ShapeDtypeStruct((B, 1, N), jnp.int32),
        grid_spec=pltpu.PrefetchScalarGridSpec(
            num_scalar_prefetch=1,
            grid=grid,
            in_specs=[
                # b-strip stats, resident across the a (reduction) axis
                pl.BlockSpec((None, 1, tb), lambda b, j, a, kt: (b, 0, j)),
                pl.BlockSpec((None, 1, tb), lambda b, j, a, kt: (b, 0, j)),
                # a-strip stats (column form), streamed each step
                pl.BlockSpec((None, ta, 1), lambda b, j, a, kt: (b, a, 0)),
                pl.BlockSpec((None, ta, 1), lambda b, j, a, kt: (b, a, 0)),
            ],
            out_specs=pl.BlockSpec((None, 1, tb), lambda b, j, a, kt: (b, 0, j)),
            scratch_shapes=[
                pltpu.VMEM((1, tb), jnp.float32),   # rank accumulator
            ]),
        compiler_params=pltpu.CompilerParams(
            dimension_semantics=("parallel", "parallel", "arbitrary")),
    )(k_tab, mp, lab, mp_col, lab_col)
    return out.reshape(B, H, W)


def _reference(pred, conf_th=0.9, fraction=0.66, ignore_index=255):
    """Plain-JAX mirror of the PyTorch semantics (O(N^2); small shapes only)."""
    B, C, H, W = pred.shape
    N = H * W
    x = pred.reshape(B, C, N).astype(jnp.float32)
    m = jnp.max(x, axis=1, keepdims=True)
    mp = (1.0 / jnp.sum(jnp.exp(x - m), axis=1, keepdims=True))[:, 0, :]   # (B, N)
    lab = jnp.argmax(x, axis=1).astype(jnp.int32)                          # (B, N)
    mask_prob = mp > conf_th
    same = lab[:, :, None] == lab[:, None, :]            # [b, a, p]
    a_idx = jnp.arange(N)[None, :, None]
    p_idx = jnp.arange(N)[None, None, :]
    beats = same & ((mp[:, :, None] > mp[:, None, :]) |
                    ((mp[:, :, None] == mp[:, None, :]) & (a_idx < p_idx)))
    rank = jnp.sum(beats, axis=1)
    count = jnp.sum(same, axis=1)
    k = jnp.floor(count.astype(jnp.float32) * jnp.float32(fraction))
    out = jnp.where(mask_prob | (rank < k), lab, ignore_index)
    return out.reshape(B, H, W)


if __name__ == "__main__":
    key = jax.random.PRNGKey(0)
    B, C, H, W = 2, 4, 16, 16
    # scale logits so a decent share of pixels clears the 0.9 confidence threshold
    pred = 3.0 * jax.random.normal(key, (B, C, H, W), dtype=jnp.float32)

    # small tiles so the demo exercises the multi-tile (b-tile x a-tile) path
    pseudo_lab = self_training_pseudo_label(pred, tile_a=128, tile_b=128)
    pseudo_lab = jax.block_until_ready(pseudo_lab)

    # sanity: every output is a valid class index or the ignore value
    valid = jnp.all((pseudo_lab == 255) |
                    ((pseudo_lab >= 0) & (pseudo_lab < C)))
    assert bool(valid), "invalid label values produced"

    # agreement vs. a plain-JAX reference (ulp-level prob differences can move
    # a pixel across a tie / threshold boundary, so allow a tiny slack)
    ref = _reference(pred)
    agreement = float(jnp.mean((pseudo_lab == ref).astype(jnp.float32)))
    assert agreement >= 0.98, f"agreement with reference too low: {agreement}"

    print("KERNEL_OK")
</pallas_src>

<mosaic_0001>
module attributes {stable_mosaic.version = 11 : i64} {
  func.func @_stats_kernel(%arg0: i32, %arg1: i32, %arg2: memref<1x4x256xf32, #tpu.memory_space<vmem>>, %arg3: memref<1x1x256xf32, #tpu.memory_space<vmem>>, %arg4: memref<1x1x256xi32, #tpu.memory_space<vmem>>) attributes {dimension_semantics = [#tpu.dimension_semantics<parallel>, #tpu.dimension_semantics<parallel>], iteration_bounds = array<i64: 2, 1>, scalar_prefetch = 0 : i64, scratch_operands = 0 : i64, tpu.core_type = #tpu.core_type<tc>, window_params = [{transform_indices = @transform_0, window_bounds = array<i64: 1, 4, 256>}, {transform_indices = @transform_1, window_bounds = array<i64: 1, 1, 256>}, {transform_indices = @transform_2, window_bounds = array<i64: 1, 1, 256>}]} {
    %c0 = arith.constant 0 : index
    %c0_0 = arith.constant 0 : index
    %c0_1 = arith.constant 0 : index
    %0 = vector.load %arg2[%c0, %c0_0, %c0_1] : memref<1x4x256xf32, #tpu.memory_space<vmem>>, vector<1x1x256xf32>
    %1 = vector.shape_cast %0 : vector<1x1x256xf32> to vector<1x256xf32>
    %c0_i32 = arith.constant 0 : i32
    %2 = vector.broadcast %c0_i32 : i32 to vector<1x256xi32>
    %c0_2 = arith.constant 0 : index
    %c1 = arith.constant 1 : index
    %c0_3 = arith.constant 0 : index
    %3 = vector.load %arg2[%c0_2, %c1, %c0_3] : memref<1x4x256xf32, #tpu.memory_space<vmem>>, vector<1x1x256xf32>
    %4 = vector.shape_cast %3 : vector<1x1x256xf32> to vector<1x256xf32>
    %5 = arith.cmpf ogt, %4, %1 : vector<1x256xf32>
    %6 = arith.select %5, %4, %1 : vector<1x256xi1>, vector<1x256xf32>
    %c1_i32 = arith.constant 1 : i32
    %7 = vector.broadcast %c1_i32 : i32 to vector<1x256xi32>
    %8 = arith.select %5, %7, %2 : vector<1x256xi1>, vector<1x256xi32>
    %c0_4 = arith.constant 0 : index
    %c2 = arith.constant 2 : index
    %c0_5 = arith.constant 0 : index
    %9 = vector.load %arg2[%c0_4, %c2, %c0_5] : memref<1x4x256xf32, #tpu.memory_space<vmem>>, vector<1x1x256xf32>
    %10 = vector.shape_cast %9 : vector<1x1x256xf32> to vector<1x256xf32>
    %11 = arith.cmpf ogt, %10, %6 : vector<1x256xf32>
    %12 = arith.select %11, %10, %6 : vector<1x256xi1>, vector<1x256xf32>
    %c2_i32 = arith.constant 2 : i32
    %13 = vector.broadcast %c2_i32 : i32 to vector<1x256xi32>
    %14 = arith.select %11, %13, %8 : vector<1x256xi1>, vector<1x256xi32>
    %c0_6 = arith.constant 0 : index
    %c3 = arith.constant 3 : index
    %c0_7 = arith.constant 0 : index
    %15 = vector.load %arg2[%c0_6, %c3, %c0_7] : memref<1x4x256xf32, #tpu.memory_space<vmem>>, vector<1x1x256xf32>
    %16 = vector.shape_cast %15 : vector<1x1x256xf32> to vector<1x256xf32>
    %17 = arith.cmpf ogt, %16, %12 : vector<1x256xf32>
    %18 = arith.select %17, %16, %12 : vector<1x256xi1>, vector<1x256xf32>
    %c3_i32 = arith.constant 3 : i32
    %19 = vector.broadcast %c3_i32 : i32 to vector<1x256xi32>
    %20 = arith.select %17, %19, %14 : vector<1x256xi1>, vector<1x256xi32>
    %c0_8 = arith.constant 0 : index
    %c0_9 = arith.constant 0 : index
    %c0_10 = arith.constant 0 : index
    %21 = vector.load %arg2[%c0_8, %c0_9, %c0_10] : memref<1x4x256xf32, #tpu.memory_space<vmem>>, vector<1x1x256xf32>
    %22 = vector.shape_cast %21 : vector<1x1x256xf32> to vector<1x256xf32>
    %23 = arith.subf %22, %18 : vector<1x256xf32>
    %24 = math.exp %23 : vector<1x256xf32>
    %c0_11 = arith.constant 0 : index
    %c1_12 = arith.constant 1 : index
    %c0_13 = arith.constant 0 : index
    %25 = vector.load %arg2[%c0_11, %c1_12, %c0_13] : memref<1x4x256xf32, #tpu.memory_space<vmem>>, vector<1x1x256xf32>
    %26 = vector.shape_cast %25 : vector<1x1x256xf32> to vector<1x256xf32>
    %27 = arith.subf %26, %18 : vector<1x256xf32>
    %28 = math.exp %27 : vector<1x256xf32>
    %29 = arith.addf %24, %28 : vector<1x256xf32>
    %c0_14 = arith.constant 0 : index
    %c2_15 = arith.constant 2 : index
    %c0_16 = arith.constant 0 : index
    %30 = vector.load %arg2[%c0_14, %c2_15, %c0_16] : memref<1x4x256xf32, #tpu.memory_space<vmem>>, vector<1x1x256xf32>
    %31 = vector.shape_cast %30 : vector<1x1x256xf32> to vector<1x256xf32>
    %32 = arith.subf %31, %18 : vector<1x256xf32>
    %33 = math.exp %32 : vector<1x256xf32>
    %34 = arith.addf %29, %33 : vector<1x256xf32>
    %c0_17 = arith.constant 0 : index
    %c3_18 = arith.constant 3 : index
    %c0_19 = arith.constant 0 : index
    %35 = vector.load %arg2[%c0_17, %c3_18, %c0_19] : memref<1x4x256xf32, #tpu.memory_space<vmem>>, vector<1x1x256xf32>
    %36 = vector.shape_cast %35 : vector<1x1x256xf32> to vector<1x256xf32>
    %37 = arith.subf %36, %18 : vector<1x256xf32>
    %38 = math.exp %37 : vector<1x256xf32>
    %39 = arith.addf %34, %38 : vector<1x256xf32>
    %cst = arith.constant 1.000000e+00 : f32
    %40 = vector.broadcast %cst : f32 to vector<1x256xf32>
    %41 = arith.divf %40, %39 : vector<1x256xf32>
    %c0_20 = arith.constant 0 : index
    %c0_21 = arith.constant 0 : index
    %c0_22 = arith.constant 0 : index
    %42 = vector.load %arg3[%c0_20, %c0_21, %c0_22] : memref<1x1x256xf32, #tpu.memory_space<vmem>>, vector<1x1x256xf32>
    %43 = vector.shape_cast %42 : vector<1x1x256xf32> to vector<1x256xf32>
    %44 = vector.shape_cast %41 : vector<1x256xf32> to vector<1x1x256xf32>
    tpu.vector_store %arg3[%c0_20, %c0_21, %c0_22], %44 {strides = array<i32>} : memref<1x1x256xf32, #tpu.memory_space<vmem>>, vector<1x1x256xf32>,
    %c0_23 = arith.constant 0 : index
    %c0_24 = arith.constant 0 : index
    %c0_25 = arith.constant 0 : index
    %45 = vector.load %arg4[%c0_23, %c0_24, %c0_25] : memref<1x1x256xi32, #tpu.memory_space<vmem>>, vector<1x1x256xi32>
    %46 = vector.shape_cast %45 : vector<1x1x256xi32> to vector<1x256xi32>
    %47 = vector.shape_cast %20 : vector<1x256xi32> to vector<1x1x256xi32>
    tpu.vector_store %arg4[%c0_23, %c0_24, %c0_25], %47 {strides = array<i32>} : memref<1x1x256xi32, #tpu.memory_space<vmem>>, vector<1x1x256xi32>,
    return
  }
  func.func @transform_0(%arg0: i32, %arg1: i32) -> (i32, i32, i32) {
    %c0_i32 = arith.constant 0 : i32
    %c0_i32_0 = arith.constant 0 : i32
    return %arg0, %c0_i32, %arg1 : i32, i32, i32
  }
  func.func @transform_1(%arg0: i32, %arg1: i32) -> (i32, i32, i32) {
    %c0_i32 = arith.constant 0 : i32
    %c0_i32_0 = arith.constant 0 : i32
    return %arg0, %c0_i32, %arg1 : i32, i32, i32
  }
  func.func @transform_2(%arg0: i32, %arg1: i32) -> (i32, i32, i32) {
    %c0_i32 = arith.constant 0 : i32
    %c0_i32_0 = arith.constant 0 : i32
    return %arg0, %c0_i32, %arg1 : i32, i32, i32
  }
}

</mosaic_0001>

<bundles_post_ra>
// kernel: tpu_custom_call.1
= control target key start
LH: loop header
LB: loop body
LE: loop exit
PB: predicated region body
PF: predicated region fallthrough
CT: control target
= control target key end

     0   :  { %8 = vsyncpa [#allocation3], 0  ;;  %s876_s0 = inlined_call_operand.hbm [shape: f32[2,4,256], index: 0, kind: input, shape index: {}]   ;;  %s877_s1 = inlined_call_operand.hbm [shape: f32[2,1,256], index: 1, kind: output, shape index: {0}]   ;;  %s878_s2 = inlined_call_operand.hbm [shape: s32[2,1,256], index: 2, kind: output, shape index: {1}]  }
   0x1   :  { %10 = vsyncpa [#allocation3 + $0x1], 0 }
   0x2   :  { %11 = vsyncpa [#allocation4], 0 }
   0x3   :  { %13 = vsyncpa [#allocation4 + $0x1], 0 }
   0x4   :  { %14 = vsyncpa [#allocation7], 0 }
   0x5   :  { %16 = vsyncpa [#allocation7 + $0x1], 0  ;;  %s658_s9 = smov 0   ;;  %s660_s10 = smov 0  }
   0x6   :  { %s662_s11 = smov 0   ;;  %s664_s12 = smov 0  }
   0x7   :  { %s666_s13 = smov 0   ;;  %s668_s14 = smov 0  }
   0x8 LB: > { %s390_s15 = sadd.s32 4294967295, %s637_s14   ;;  %s391_s16 = sadd.s32 4294967294, %s637_s14   ;;  %s637_s14 = sphi %s668_s14, %s22_s14   ;;  %s633_s13 = sphi %s666_s13, %s896_s13   ;;  %s629_s12 = sphi %s664_s12, %s895_s12   ;;  %s625_s11 = sphi %s662_s11, %s894_s11   ;;  %s621_s10 = sphi %s660_s10, %s893_s10   ;;  %s617_s9 = sphi %s658_s9, %s892_s9  }
   0x9   : > { %s34_s17 = sadd.s32 1, %s633_s13  ;;  %s43_s18 = sadd.s32 1, %s625_s11 }
   0xa   : > { %p36_p0 = scmp.ge.s32.totalorder %s34_s17, 2  ;;  %p50_p1 = scmp.ne.s32.totalorder %s625_s11, %s621_s10 }
   0xb   : > { %p51_p2 = scmp.eq.s32.totalorder %s637_s14, 0  ;;  %p56_p3 = scmp.ne.s32.totalorder %s621_s10, %s617_s9 }
   0xc   : > { %s898_s17 = smov (%p36_p0, %s34_s17), 0  ;;  %p57_p5 = scmp.eq.s32.totalorder %s390_s15, 0 }
   0xd   : > { %p699_p4 = por %p51_p2, %p50_p1  ;;  %s38_s20 = ssub.s32 %s633_s13, %s898_s17 }
   0xe   : > { %p82_p6 = scmp.eq.s32.totalorder %s390_s15, 1  ;;  %p41_p7 = scmp.eq.s32.totalorder %s38_s20, 0 }
   0xf   : > { %p705_p8 = por %p57_p5, %p56_p3  ;;  %p88_p10 = scmp.eq.s32.totalorder %s391_s16, 1 }
  0x10   : > { %p709_p9 = por %p82_p6, %p50_p1  ;;  %p432_p13 = scmp.lt.s32.totalorder %s637_s14, 2 }
  0x11   : > { %s714_s23 = scalar_select %p41_p7, %s625_s11, %s43_s18  }
  0x12   : > { %s882_s22 = scalar_select %p709_p9, 1, 0 }
  0x13   : > { %p716_p11 = por %p88_p10, %p56_p3  ;;  %s136_s25 = sand.u32 1, %s625_s11  }
  0x14   : > { %s394_s26 = sshll.u32 %s136_s25, 3  ;;  %s412_s27 = sshll.u32 %s633_s13, 7 }
  0x15   : > { %s883_s24 = scalar_select %p716_p11, 1, 0 }
  0x16   : > { %s727_s30 = scalar_lea.hbm %s876_s0, %s412_s27  ;;  %s140_s3 = scalar_lea.vmem [#allocation2], %s394_s26 }
  0x17   : > { %s150_s4 = sshll.u32 %s140_s3, 4  ;;  %p733_p0 = pnand %p432_p13, %p699_p4  ;;  %s729_s4 = int_to_ptr.vmem [resolvable:$true] %s150_s4 }
  0x18   : > { %s137_s6 = scalar_lea.sflag [#allocation3], %s136_s25  ;;  %s493_s7 = scalar_lea.hbm %s727_s30, 128 }
  0x19   : > { %p494_p3 = scmp.ne.s32.totalorder %s727_s30, %s493_s7  ;;  %p495_p5 = pneg %p733_p0 }
  0x1a   : > { %s498_s16 = scalar_lea.hbm %s876_s0, 256  ;;  %p499_p4 = scmp.lt.u32.totalorder %s727_s30, %s876_s0 }
  0x1b   : > { %p496_p6 = pnand %p495_p5, %p494_p3  ;;  %p500_p10 = scmp.lt.u32.totalorder %s498_s16, %s493_s7 }
  0x1c   : > { %p502_p12 = scmp.lt.u32.totalorder %s493_s7, %s727_s30 }
  0x1d   : > { %p497_p7 = pneg %p496_p6  ;;  %p501_p13 = por %p500_p10, %p499_p4 }
  0x1f   : > { %p503_p1 = por %p502_p12, %p501_p13 }
  0x21   : > { %p504_p2 = pnand %p503_p1, %p497_p7 }
  0x23   : > { %507 = shalt.err (!%p504_p2)
}
  0x24   : > { %s508_s20 = scalar_lea.vmem %s729_s4, 128  ;;  %s639_s25 = smov [#allocation2]  }
  0x25   : > { %p509_p3 = scmp.ne.s32.totalorder %s729_s4, %s508_s20  ;;  %s513_s26 = sshll.u32 %s639_s25, 4  ;;  %s514_s26 = int_to_ptr.vmem [resolvable:$false] %s513_s26 }
  0x26   : > { %s515_s27 = scalar_lea.vmem %s514_s26, 256  ;;  %p516_p9 = scmp.lt.s32.totalorder %s729_s4, %s514_s26 }
  0x27   : > { %p511_p6 = pnand %p509_p3, %p495_p5  ;;  %p517_p4 = scmp.lt.s32.totalorder %s515_s27, %s508_s20 }
  0x29   : > { %p512_p11 = pneg %p511_p6  ;;  %p518_p10 = por %p517_p4, %p516_p9 }
  0x2b   : > { %p519_p12 = pnand %p518_p10, %p512_p11 }
  0x2d   : > { %522 = shalt.err (!%p519_p12)
}
  0x2e   : > { %424 = dma.hbm_to_vmem [thread:$0]  (!%p733_p0), %s727_s30, 128, %s729_s4, %s137_s6  }
  0x2f   : > { %p885_p1 = scmp.lt.s32.totalorder %s637_s14, 3  ;;  %p886_p2 = scmp.ge.s32.totalorder %s637_s14, 1 }
  0x31   : > { %p156_p5 = pnand %p886_p2, %p885_p1 }
  0x32   : > { %s769_s28 = sand.u32 (!%p156_p5), 1, %s621_s10  }
  0x33   : > { %159 = sbr.rel (%p156_p5) target bundleno = 131 (0x83), region = 24  ;;  %s398_s29 = sshll.u32 (!%p156_p5), %s769_s28, 3 }
  0x34   : > { %s162_s3 = scalar_lea.sflag (!%p156_p5), [#allocation3], %s769_s28  ;;  %s165_s7 = scalar_lea.vmem (!%p156_p5), [#allocation2], %s398_s29 }
  0x3a   : > { %604 = dma.done.wait (%p705_p8), %s162_s3, 128  }
  0x3b   : > { %606 = vsyncadd (%p705_p8), %s162_s3, 4294967168  ;;  %s399_s30 = sshll.u32 %s769_s28, 1  ;;  %v194_v0 = vld [vmem:[%s165_s7] ss:$4 sm:$0x3]  ;;  %v227_v2 = vlaneseq  ;;  %v640_v6 = vmov 0  }
  0x3c   : > { %v401_v1 = vld [vmem:[%s165_s7 + $0x1] ss:$4 sm:$0x3]  ;;  %v402_v3 = vld [vmem:[%s165_s7 + $0x2] ss:$4 sm:$0x3] }
  0x3d   : > { %vm197_vm0 = vcmp.gt.f32.partialorder %v401_v1, %v194_v0  ;;  %s190_s4 = scalar_lea.vmem [#allocation6], %s399_s30  ;;  %v403_v5 = vld [vmem:[%s165_s7 + $0x3] ss:$4 sm:$0x3]  ;;  %s413_s21 = sshll.u32 %s629_s12, 5  ;;  %vm781_vm2 = vcmp.lt.s32.totalorder %v227_v2, 256 }
  0x3e   : > { %s271_s5 = sshll.u32 %s190_s4, 4  ;;  %v198_v4 = vsel %vm197_vm0, %v401_v1, %v194_v0  ;;  %v199_v7 = vsel %vm197_vm0, 1, %v640_v6  ;;  %s792_s15 = scalar_lea.hbm %s878_s2, %s413_s21  ;;  %s785_s5 = int_to_ptr.vmem [resolvable:$true] %s271_s5 }
  0x3f   : > { %vm202_vm1 = vcmp.gt.f32.partialorder %v402_v3, %v198_v4  ;;  %s239_s16 = scalar_lea.sflag [#allocation7], %s769_s28  ;;  %s523_s18 = scalar_lea.vmem %s785_s5, 32 }
  0x40   : > { %v203_v8 = vsel %vm202_vm1, %v402_v3, %v198_v4  ;;  %v204_v10 = vsel %vm202_vm1, 2, %v199_v7  ;;  %p524_p8 = scmp.ne.s32.totalorder %s785_s5, %s523_s18  ;;  %p889_p9 = scmp.ne.s32.totalorder %s882_s22, 0 }
  0x41   : > { %vm207_vm3 = vcmp.gt.f32.partialorder %v403_v5, %v203_v8  ;;  %s641_s19 = smov [#allocation6]  }
  0x42   : > { %v208_v11 = vsel %vm207_vm3, %v403_v5, %v203_v8  ;;  %v209_v12 = vsel %vm207_vm3, 3, %v204_v10  ;;  %p525_p11 = pnand %p524_p8, %p889_p9  ;;  %s527_s20 = sshll.u32 %s641_s19, 4  ;;  %s528_s20 = int_to_ptr.vmem [resolvable:$false] %s527_s20 }
  0x43   : > { %v210_v13 = vsub.f32 %v194_v0, %v208_v11  ;;  %v213_v14 = vsub.f32 %v401_v1, %v208_v11  ;;  %v217_v15 = vsub.f32 %v402_v3, %v208_v11  ;;  %v221_v16 = vsub.f32 %v403_v5, %v208_v11  ;;  %232 = vst.msk [vmem:[%s190_s4] sm:$0x3] %vm781_vm2, %v209_v12  ;;  %s529_s25 = scalar_lea.vmem %s528_s20, 64  ;;  %p530_p7 = scmp.lt.s32.totalorder %s785_s5, %s528_s20 }
  0x44   : > { %p526_p0 = pneg %p525_p11  ;;  %p531_p13 = scmp.lt.s32.totalorder %s529_s25, %s523_s18 }
  0x46   : > { %p532_p3 = por %p531_p13, %p530_p7 }
  0x48   : > { %p533_p6 = pnand %p532_p3, %p526_p0 }
  0x4a   : > { %536 = shalt.err (!%p533_p6)
}
  0x4b   : > { %s537_s26 = scalar_lea.hbm %s792_s15, 32  ;;  %s541_s3 = scalar_lea.hbm %s878_s2, 64 }
  0x4c   : > { %p538_p4 = scmp.ne.s32.totalorder %s792_s15, %s537_s26  ;;  %p542_p1 = scmp.lt.u32.totalorder %s792_s15, %s878_s2 }
  0x4d   : > { %p543_p2 = scmp.lt.u32.totalorder %s541_s3, %s537_s26  ;;  %p545_p8 = scmp.lt.u32.totalorder %s537_s26, %s792_s15 }
  0x4e   : > { %p539_p10 = pnand %p538_p4, %p889_p9 }
  0x4f   : > { %p544_p5 = por %p543_p2, %p542_p1 }
  0x50   : > { %p540_p12 = pneg %p539_p10 }
  0x51   : > { %p546_p11 = por %p545_p8, %p544_p5 }
  0x53   : > { %p547_p0 = pnand %p546_p11, %p540_p12 }
  0x55   : > { %550 = shalt.err (!%p547_p0)
}
  0x56   : > { %418 = dma.vmem_to_hbm [thread:$0]  (%p889_p9), %s785_s5, 32, %s792_s15, %s239_s16   ;;  %v211_v17 = vmul.f32 1.442695, %v210_v13  ;;  %v214_v18 = vmul.f32 1.442695, %v213_v14 }
  0x57   : > { %v218_v19 = vmul.f32 1.442695, %v217_v15  ;;  %v222_v20 = vmul.f32 1.442695, %v221_v16  ;;  %s183_s5 = scalar_lea.vmem [#allocation5], %s399_s30  ;;  %s827_s16 = scalar_lea.hbm %s877_s1, %s413_s21 }
  0x58   : > { %483 = vpow2.f32 %v211_v17  ;;  %s255_s6 = sshll.u32 %s183_s5, 4  ;;  %s234_s18 = scalar_lea.sflag [#allocation4], %s769_s28  ;;  %s820_s6 = int_to_ptr.vmem [resolvable:$true] %s255_s6 }
  0x59   : > { %485 = vpow2.f32 %v214_v18  ;;  %s551_s19 = scalar_lea.vmem %s820_s6, 32  ;;  %s642_s30 = smov [#allocation5]  }
  0x5a   : > { %487 = vpow2.f32 %v218_v19  ;;  %p552_p7 = scmp.ne.s32.totalorder %s820_s6, %s551_s19  ;;  %s555_s12 = sshll.u32 %s642_s30, 4  ;;  %s556_s12 = int_to_ptr.vmem [resolvable:$false] %s555_s12 }
  0x5b   : > { %489 = vpow2.f32 %v222_v20  ;;  %s557_s20 = scalar_lea.vmem %s556_s12, 64  ;;  %p558_p6 = scmp.lt.s32.totalorder %s820_s6, %s556_s12 }
  0x5c   : > { %p553_p13 = pnand %p552_p7, %p889_p9  ;;  %p559_p4 = scmp.lt.s32.totalorder %s557_s20, %s551_s19 }
  0x5e   : > { %p554_p3 = pneg %p553_p13  ;;  %p560_p10 = por %p559_p4, %p558_p6 }
  0x60   : > { %p561_p12 = pnand %p560_p10, %p554_p3 }
  0x62   : > { %v484_v21 = vpop.eup %483 }
  0x63   : > { %v486_v22 = vpop.eup %485 }
  0x64   : > { %v488_v23 = vpop.eup %487  ;;  %v216_v24 = vadd.f32 %v486_v22, %v484_v21 }
  0x65   : > { %v490_v25 = vpop.eup %489 }
  0x66   : > { %v220_v26 = vadd.f32 %v488_v23, %v216_v24 }
  0x68   : > { %v224_v27 = vadd.f32 %v490_v25, %v220_v26 }
  0x6a   : > { %491 = vrcp.f32 %v224_v27 }
  0x74   : > { %v492_v28 = vpop.eup %491 }
  0x75   : > { %231 = vst.msk [vmem:[%s183_s5] sm:$0x3] %vm781_vm2, %v492_v28 }
  0x76   : > { %564 = shalt.err (!%p561_p12)
}
  0x77   : > { %s565_s28 = scalar_lea.hbm %s827_s16, 32  ;;  %s569_s26 = scalar_lea.hbm %s877_s1, 64 }
  0x78   : > { %p566_p1 = scmp.ne.s32.totalorder %s827_s16, %s565_s28  ;;  %p570_p8 = scmp.lt.u32.totalorder %s827_s16, %s877_s1 }
  0x79   : > { %p571_p11 = scmp.lt.u32.totalorder %s569_s26, %s565_s28  ;;  %p573_p7 = scmp.lt.u32.totalorder %s565_s28, %s827_s16 }
  0x7a   : > { %p567_p2 = pnand %p566_p1, %p889_p9 }
  0x7b   : > { %p572_p0 = por %p571_p11, %p570_p8 }
  0x7c   : > { %p568_p5 = pneg %p567_p2 }
  0x7d   : > { %p574_p13 = por %p573_p7, %p572_p0 }
  0x7f   : > { %p575_p3 = pnand %p574_p13, %p568_p5 }
  0x81   : > { %578 = shalt.err (!%p575_p3)
}
  0x82   : > { %417 = dma.vmem_to_hbm [thread:$0]  (%p889_p9), %s820_s6, 32, %s827_s16, %s234_s18  }
  0x83 PF: > { %s283_s3 = sand.u32 1, %s617_s9   ;;  %p890_p6 = scmp.ne.s32.totalorder %s883_s24, 0 }
  0x84   : > { %p891_p4 = scmp.ge.s32.totalorder %s637_s14, 2  ;;  %s284_s7 = scalar_lea.sflag [#allocation4], %s283_s3 }
  0x86   : > { %p426_p10 = pnand %p891_p4, %p890_p6 }
  0x88   : > { %608 = dma.done.wait (!%p426_p10), %s284_s7, 32  }
  0x89   : > { %610 = vsyncadd (!%p426_p10), %s284_s7, 4294967264  ;;  %s293_s4 = scalar_lea.sflag [#allocation7], %s283_s3 }
  0x8a   : > { %612 = dma.done.wait (!%p426_p10), %s293_s4, 32  }
  0x8b   : > { %614 = vsyncadd (!%p426_p10), %s293_s4, 4294967264  ;;  %s22_s14 = sadd.s32 1, %s637_s14   ;;  %s892_s9 = smov %s621_s10 }
  0x8c   : > { %p19_p12 = scmp.ge.s32.totalorder %s22_s14, 4   ;;  %s893_s10 = smov %s625_s11 }
  0x8d   : > { %s894_s11 = smov %s714_s23  ;;  %s895_s12 = smov %s633_s13 }
  0x8e   : > { %s896_s13 = smov %s898_s17  ;;  %21 = sbr.rel (!%p19_p12) target bundleno = 8 (0x8), region = 89 }
  0x95   :  { %298 = vsyncpa [#allocation3], 1 }
  0x96   :  { %300 = vsyncpa [#allocation3 + $0x1], 1 }
  0x97   :  { %301 = vsyncpa [#allocation4], 1 }
  0x98   :  { %303 = vsyncpa [#allocation4 + $0x1], 1 }
  0x99   :  { %304 = vsyncpa [#allocation7], 1 }
  0x9a   :  { %306 = vsyncpa [#allocation7 + $0x1], 1 }

</bundles_post_ra>
